<compile_context>
chip_gen: v6e
topology: v6e:2x2x1
jax: 0.10.0
libtpu: 0.0.40
codegen_flags: <defaults>
</compile_context>

<pallas_src>
import functools

import jax
import jax.numpy as jnp
from jax.experimental import pallas as pl
from jax.experimental.pallas import tpu as pltpu


# ----------------------------------------------------------------------------
# helpers
# ----------------------------------------------------------------------------
def _pick_tile(dim, pref, align):
    """Largest multiple of `align` dividing `dim` and <= pref, else full dim."""
    if dim <= pref:
        return dim
    t = (pref // align) * align
    while t >= align:
        if dim % t == 0:
            return t
        t -= align
    # TODO(synk): dims with no aligned divisor <= pref fall back to an untiled
    # full block; very large awkward N would need pad + mask instead.
    return dim


def _vmem_ceiling_bytes():
    """Physical VMEM minus ~16 MiB headroom (48 MiB v7x, ~112 MiB v5e/v6e)."""
    cap = 64 * 2**20
    try:
        info = pltpu.get_tpu_info()
        cap = int(getattr(info, "vmem_capacity_bytes", cap))
    except Exception:
        pass
    return max(cap - 16 * 2**20, 32 * 2**20)


# ----------------------------------------------------------------------------
# fused GCN layer kernel
#   grid (B, M_tiles, K_tiles), K last ("arbitrary"), f32 VMEM accumulator.
#   per step :  z_k = x_k @ W      (W resident in VMEM)
#               acc += adj[m, k] @ z_k
#   k == last:  h = PReLU(acc + bias); store h; store per-M-tile column sums
#               (sublane reduce, broadcast to 8 sublanes -> lane-dense store).
# ----------------------------------------------------------------------------
def _gcn_fused_kernel(adj_ref, x_ref, w_ref, b_ref, alpha_ref,
                      h_ref, csum_ref, acc_ref, *, tk, x_resident):
    k = pl.program_id(2)
    nk = pl.num_programs(2)

    @pl.when(k == 0)
    def _init():
        acc_ref[...] = jnp.zeros_like(acc_ref)

    adj_t = adj_ref[0]                                   # (tm, tk)  op dtype
    if x_resident:
        start = pl.multiple_of(k * tk, tk)
        x_k = x_ref[0, pl.ds(start, tk), :]              # (tk, din) op dtype
    else:
        x_k = x_ref[0]                                   # (tk, din) op dtype
    z_k = jnp.dot(x_k, w_ref[...],
                  preferred_element_type=jnp.float32).astype(adj_t.dtype)
    acc_ref[...] += jnp.dot(adj_t, z_k, preferred_element_type=jnp.float32)

    @pl.when(k == nk - 1)
    def _finalize():
        alpha = alpha_ref[0]
        h = acc_ref[...] + b_ref[...]                    # (tm, d) f32
        h = jnp.where(h >= 0.0, h, alpha * h)            # PReLU (single alpha)
        h_ref[0] = h.astype(h_ref.dtype)
        col = jnp.sum(h, axis=0, keepdims=True)          # (1, d) sublane reduce
        csum_ref[0, 0] = jnp.broadcast_to(col, (8, h.shape[1]))


def _gcn_layer(x, adj, w, b, alpha, *, out_dtype, tile_pref=512):
    """h = PReLU(adj @ (x @ w) + b); also per-M-tile column sums of h.

    x: (B,N,din) op dtype, adj: (B,N,N) op dtype, w: (din,d) op dtype,
    b: (1,d) f32, alpha: (1,) f32.
    Returns h: (B,N,d) out_dtype, csum: (B,num_m,8,d) f32 (row 0 = column sum).
    """
    B, N, din = x.shape
    d = w.shape[1]
    op_itemsize = jnp.dtype(adj.dtype).itemsize

    tm = _pick_tile(N, tile_pref, 8)
    if B == 1 and (N // tm) < 2 and N % 16 == 0:
        tm = N // 2                       # keep >=2 parallel blocks (v7x megacore)
    tk = _pick_tile(N, tile_pref, 128)
    num_m = N // tm
    num_k = N // tk

    # x resident per batch unless the copy would be large; then stream K-tiles.
    x_resident = (N * din * op_itemsize) <= (8 * 2**20)
    if x_resident:
        x_spec = pl.BlockSpec((1, N, din), lambda bb, m, k: (bb, 0, 0))
    else:
        x_spec = pl.BlockSpec((1, tk, din), lambda bb, m, k: (bb, k, 0))

    grid_spec = pltpu.PrefetchScalarGridSpec(
        num_scalar_prefetch=0,
        grid=(B, num_m, num_k),
        in_specs=[
            pl.BlockSpec((1, tm, tk), lambda bb, m, k: (bb, m, k)),   # adj tile
            x_spec,                                                   # x
            pl.BlockSpec((din, d), lambda bb, m, k: (0, 0)),          # W (resident)
            pl.BlockSpec((1, d), lambda bb, m, k: (0, 0)),            # bias
            pl.BlockSpec(memory_space=pltpu.MemorySpace.SMEM),        # alpha (1,)
        ],
        out_specs=[
            pl.BlockSpec((1, tm, d), lambda bb, m, k: (bb, m, 0)),    # h
            pl.BlockSpec((1, 1, 8, d), lambda bb, m, k: (bb, m, 0, 0)),
        ],
        scratch_shapes=[pltpu.VMEM((tm, d), jnp.float32)],
    )

    x_vmem = (2 * N * din if x_resident else 2 * tk * din) * op_itemsize
    step_bytes = (2 * tm * tk * op_itemsize + x_vmem
                  + 2 * din * d * op_itemsize + tm * d * 4
                  + 2 * tm * d * jnp.dtype(out_dtype).itemsize
                  + 2 * 8 * d * 4 + 2 * d * 4)
    vmem_limit = int(min(_vmem_ceiling_bytes(), max(2 * step_bytes, 32 * 2**20)))

    x_traffic = B * N * din if x_resident else B * num_m * N * din
    cost = pl.CostEstimate(
        flops=2 * B * N * N * d + 2 * B * num_m * N * din * d,
        transcendentals=0,
        bytes_accessed=op_itemsize * (B * N * N + x_traffic + din * d)
                       + 4 * (B * N * d + B * num_m * 8 * d + d),
    )

    h, csum = pl.pallas_call(
        functools.partial(_gcn_fused_kernel, tk=tk, x_resident=x_resident),
        grid_spec=grid_spec,
        out_shape=(
            jax.ShapeDtypeStruct((B, N, d), out_dtype),
            jax.ShapeDtypeStruct((B, num_m, 8, d), jnp.float32),
        ),
        compiler_params=pltpu.CompilerParams(
            dimension_semantics=("parallel", "parallel", "arbitrary"),
            vmem_limit_bytes=vmem_limit,
        ),
        cost_estimate=cost,
    )(adj, x, w, b, alpha)
    return h, csum


# ----------------------------------------------------------------------------
# full forward
# ----------------------------------------------------------------------------
def dgi_node22_forward(seq, adj, w1, b1, alpha1, w2, b2, alpha2, *,
                       use_bf16=False, tile_pref=512):
    """seq: (B,N,n_in) f32, adj: (B,N,N) f32 dense (sparse=False path).
    w* are the transposed nn.Linear weights, shape (in, out).
    Returns (h_11: (B,N,128) f32, c: (B,128) f32)."""
    B, N, _ = seq.shape
    n_h = w1.shape[1]

    # Pad the hidden dim to a multiple of 128 for lane-dense vregs / stores.
    # Bit-identical: padded h1 columns stay exactly 0 through bias + PReLU and
    # the matching padded rows of W2 are 0.
    n_h_pad = ((n_h + 127) // 128) * 128
    if n_h_pad != n_h:
        w1 = jnp.pad(w1, ((0, 0), (0, n_h_pad - n_h)))
        b1 = jnp.pad(b1, ((0, 0), (0, n_h_pad - n_h)))
        w2 = jnp.pad(w2, ((0, n_h_pad - n_h), (0, 0)))

    # bf16 path: cast the HBM-resident MXU operands once in the wrapper so the
    # DMAs themselves move bf16.  Bias / PReLU / accumulation / readout stay f32.
    op_dtype = jnp.bfloat16 if use_bf16 else jnp.float32
    adj_op = adj.astype(op_dtype)

    # ---- GCN layer 1: h1 = PReLU(adj @ (seq @ W1) + b1) ----
    h1, _ = _gcn_layer(seq.astype(op_dtype), adj_op, w1.astype(op_dtype),
                       b1.astype(jnp.float32), alpha1.astype(jnp.float32),
                       out_dtype=op_dtype, tile_pref=tile_pref)

    # ---- GCN layer 2: h11 = PReLU(adj @ (h1 @ W2) + b2) ----
    h11, csum = _gcn_layer(h1, adj_op, w2.astype(op_dtype),
                           b2.astype(jnp.float32), alpha2.astype(jnp.float32),
                           out_dtype=jnp.float32, tile_pref=tile_pref)

    # TODO(synk): F.dropout with training=True (random masking) not implemented;
    # eval-mode dropout is the identity, which is what is computed here.

    # AvgReadout (msk=None): mean over nodes, finalized from per-tile sums.
    c = jnp.sum(csum[:, :, 0, :], axis=1) * (1.0 / N)
    return h11, c


# ----------------------------------------------------------------------------
# reference + self-test
# ----------------------------------------------------------------------------
def _reference(seq, adj, w1, b1, alpha1, w2, b2, alpha2):
    hp = jax.lax.Precision.HIGHEST

    def prelu(x, a):
        return jnp.where(x >= 0.0, x, a * x)

    z1 = jnp.einsum("bni,ih->bnh", seq, w1, precision=hp)
    h1 = prelu(jnp.einsum("bnm,bmh->bnh", adj, z1, precision=hp) + b1, alpha1[0])
    z2 = jnp.einsum("bnh,ho->bno", h1, w2, precision=hp)
    h11 = prelu(jnp.einsum("bnm,bmo->bno", adj, z2, precision=hp) + b2, alpha2[0])
    return h11, jnp.mean(h11, axis=1)


def _make_inputs(B, N, n_in, n_h, n_out, key):
    ks = jax.random.split(key, 6)
    seq = jax.random.normal(ks[0], (B, N, n_in), dtype=jnp.float32)
    adj_raw = jax.random.uniform(ks[1], (B, N, N), dtype=jnp.float32)
    adj = adj_raw / jnp.sum(adj_raw, axis=-1, keepdims=True)   # row-normalized
    # nn.Linear weight is (out, in); kernels use the transposed (in, out) form.
    w1 = jax.random.normal(ks[2], (n_in, n_h), dtype=jnp.float32) * 0.1
    b1 = jax.random.normal(ks[3], (1, n_h), dtype=jnp.float32) * 0.01
    w2 = jax.random.normal(ks[4], (n_h, n_out), dtype=jnp.float32) * 0.1
    b2 = jax.random.normal(ks[5], (1, n_out), dtype=jnp.float32) * 0.01
    a1 = jnp.array([0.25], dtype=jnp.float32)   # nn.PReLU default init
    a2 = jnp.array([0.25], dtype=jnp.float32)
    return seq, adj, w1, b1, a1, w2, b2, a2


if __name__ == "__main__":
    fwd = jax.jit(dgi_node22_forward)

    # Small, module-consistent shapes (full-N blocks, single K step).
    args_s = _make_inputs(2, 16, 32, 64, 128, jax.random.PRNGKey(0))
    h11_s, c_s = fwd(*args_s)
    jax.block_until_ready((h11_s, c_s))
    h11_sr, c_sr = _reference(*args_s)
    assert h11_s.shape == (2, 16, 128) and c_s.shape == (2, 128)
    assert jnp.allclose(h11_s, h11_sr, atol=1e-3, rtol=1e-3)
    assert jnp.allclose(c_s, c_sr, atol=1e-3, rtol=1e-3)

    # Larger case exercising the tiled accumulator path (grid (2, 2, 2)).
    args_b = _make_inputs(2, 1024, 32, 64, 128, jax.random.PRNGKey(0))
    h11_b, c_b = fwd(*args_b)
    jax.block_until_ready((h11_b, c_b))
    h11_br, c_br = _reference(*args_b)
    assert jnp.allclose(h11_b, h11_br, atol=2e-3, rtol=2e-3)
    assert jnp.allclose(c_b, c_br, atol=2e-3, rtol=2e-3)

    # bf16 HBM operands (adj/x/W) with f32 accumulation: fast path, looser tol.
    fwd_bf16 = jax.jit(functools.partial(dgi_node22_forward, use_bf16=True))
    h11_q, c_q = fwd_bf16(*args_b)
    jax.block_until_ready((h11_q, c_q))
    assert jnp.allclose(h11_q, h11_br, atol=5e-2, rtol=5e-2)
    assert jnp.allclose(c_q, c_br, atol=5e-2, rtol=5e-2)

    print("KERNEL_OK")
</pallas_src>

<mosaic_0001>
module attributes {stable_mosaic.version = 11 : i64} {
  func.func @_gcn_fused_kernel(%arg0: i32, %arg1: i32, %arg2: i32, %arg3: memref<1x16x16xf32, #tpu.memory_space<vmem>>, %arg4: memref<1x16x32xf32, #tpu.memory_space<vmem>>, %arg5: memref<32x128xf32, #tpu.memory_space<vmem>>, %arg6: memref<1x128xf32, #tpu.memory_space<vmem>>, %arg7: memref<1xf32, #tpu.memory_space<smem>>, %arg8: memref<1x16x128xf32, #tpu.memory_space<vmem>>, %arg9: memref<1x1x8x128xf32, #tpu.memory_space<vmem>>, %arg10: memref<16x128xf32, #tpu.memory_space<vmem>>) attributes {dimension_semantics = [#tpu.dimension_semantics<parallel>, #tpu.dimension_semantics<parallel>, #tpu.dimension_semantics<arbitrary>], iteration_bounds = array<i64: 2, 1, 1>, scalar_prefetch = 0 : i64, scratch_operands = 1 : i64, tpu.core_type = #tpu.core_type<tc>, window_params = [{transform_indices = @transform_0, window_bounds = array<i64: 1, 16, 16>}, {transform_indices = @transform_1, window_bounds = array<i64: 1, 16, 32>}, {pipeline_mode = #tpu.pipeline_mode<synchronous>, transform_indices = @transform_2, window_bounds = array<i64: 32, 128>}, {pipeline_mode = #tpu.pipeline_mode<synchronous>, transform_indices = @transform_3, window_bounds = array<i64: 1, 128>}, {transform_indices = @transform_4, window_bounds = array<i64: 1>}, {transform_indices = @transform_5, window_bounds = array<i64: 1, 16, 128>}, {transform_indices = @transform_6, window_bounds = array<i64: 1, 1, 8, 128>}]} {
    %c0_i32 = arith.constant 0 : i32
    %0 = arith.cmpi eq, %arg2, %c0_i32 : i32
    %1 = arith.extui %0 : i1 to i32
    %c0_i32_0 = arith.constant 0 : i32
    %2 = arith.cmpi ne, %1, %c0_i32_0 : i32
    scf.if %2 {
      %cst_14 = arith.constant 0.000000e+00 : f32
      %19 = vector.broadcast %cst_14 : f32 to vector<16x128xf32>
      %c0_15 = arith.constant 0 : index
      %c0_16 = arith.constant 0 : index
      %20 = vector.load %arg10[%c0_15, %c0_16] : memref<16x128xf32, #tpu.memory_space<vmem>>, vector<16x128xf32>
      tpu.vector_store %arg10[%c0_15, %c0_16], %19 {strides = array<i32>} : memref<16x128xf32, #tpu.memory_space<vmem>>, vector<16x128xf32>,
    } else {
    }
    %c0 = arith.constant 0 : index
    %c0_1 = arith.constant 0 : index
    %c0_2 = arith.constant 0 : index
    %3 = vector.load %arg3[%c0, %c0_1, %c0_2] : memref<1x16x16xf32, #tpu.memory_space<vmem>>, vector<1x16x16xf32>
    %4 = vector.shape_cast %3 : vector<1x16x16xf32> to vector<16x16xf32>
    %c16_i32 = arith.constant 16 : i32
    %5 = arith.muli %arg2, %c16_i32 : i32
    %6 = tpu.assume_multiple %5, 16 : i32
    %c0_3 = arith.constant 0 : index
    %7 = arith.index_cast %6 : i32 to index
    %c0_4 = arith.constant 0 : index
    %8 = vector.load %arg4[%c0_3, %7, %c0_4] : memref<1x16x32xf32, #tpu.memory_space<vmem>>, vector<1x16x32xf32>
    %9 = vector.shape_cast %8 : vector<1x16x32xf32> to vector<16x32xf32>
    %c0_5 = arith.constant 0 : index
    %c0_6 = arith.constant 0 : index
    %10 = vector.load %arg5[%c0_5, %c0_6] : memref<32x128xf32, #tpu.memory_space<vmem>>, vector<32x128xf32>
    %cst = arith.constant dense<0.000000e+00> : vector<16x128xf32>
    %11 = tpu.matmul %9, %10, %cst {dimension_numbers = #tpu.dot_dimension_numbers<[1], [0], [0], [1], [0, 0, 1, 1], [], []>} : vector<16x32xf32>, vector<32x128xf32>, vector<16x128xf32> -> vector<16x128xf32>
    %c0_7 = arith.constant 0 : index
    %c0_8 = arith.constant 0 : index
    %12 = vector.load %arg10[%c0_7, %c0_8] : memref<16x128xf32, #tpu.memory_space<vmem>>, vector<16x128xf32>
    %cst_9 = arith.constant dense<0.000000e+00> : vector<16x128xf32>
    %13 = tpu.matmul %4, %11, %cst_9 {dimension_numbers = #tpu.dot_dimension_numbers<[1], [0], [0], [1], [0, 0, 1, 1], [], []>} : vector<16x16xf32>, vector<16x128xf32>, vector<16x128xf32> -> vector<16x128xf32>
    %14 = arith.addf %12, %13 : vector<16x128xf32>
    %c0_10 = arith.constant 0 : index
    %c0_11 = arith.constant 0 : index
    %15 = vector.load %arg10[%c0_10, %c0_11] : memref<16x128xf32, #tpu.memory_space<vmem>>, vector<16x128xf32>
    tpu.vector_store %arg10[%c0_10, %c0_11], %14 {strides = array<i32>} : memref<16x128xf32, #tpu.memory_space<vmem>>, vector<16x128xf32>,
    %c0_i32_12 = arith.constant 0 : i32
    %16 = arith.cmpi eq, %arg2, %c0_i32_12 : i32
    %17 = arith.extui %16 : i1 to i32
    %c0_i32_13 = arith.constant 0 : i32
    %18 = arith.cmpi ne, %17, %c0_i32_13 : i32
    scf.if %18 {
      %c0_14 = arith.constant 0 : index
      %19 = memref.load %arg7[%c0_14] : memref<1xf32, #tpu.memory_space<smem>>
      %c0_15 = arith.constant 0 : index
      %c0_16 = arith.constant 0 : index
      %20 = vector.load %arg10[%c0_15, %c0_16] : memref<16x128xf32, #tpu.memory_space<vmem>>, vector<16x128xf32>
      %c0_17 = arith.constant 0 : index
      %c0_18 = arith.constant 0 : index
      %21 = vector.load %arg6[%c0_17, %c0_18] : memref<1x128xf32, #tpu.memory_space<vmem>>, vector<1x128xf32>
      %22 = vector.broadcast %21 : vector<1x128xf32> to vector<16x128xf32>
      %23 = arith.addf %20, %22 : vector<16x128xf32>
      %cst_19 = arith.constant 0.000000e+00 : f32
      %24 = vector.broadcast %cst_19 : f32 to vector<16x128xf32>
      %25 = arith.cmpf oge, %23, %24 : vector<16x128xf32>
      %26 = vector.broadcast %19 : f32 to vector<16x128xf32>
      %27 = arith.mulf %26, %23 : vector<16x128xf32>
      %28 = arith.select %25, %23, %27 : vector<16x128xi1>, vector<16x128xf32>
      %c0_20 = arith.constant 0 : index
      %c0_21 = arith.constant 0 : index
      %c0_22 = arith.constant 0 : index
      %29 = vector.load %arg8[%c0_20, %c0_21, %c0_22] : memref<1x16x128xf32, #tpu.memory_space<vmem>>, vector<1x16x128xf32>
      %30 = vector.shape_cast %29 : vector<1x16x128xf32> to vector<16x128xf32>
      %31 = vector.shape_cast %28 : vector<16x128xf32> to vector<1x16x128xf32>
      tpu.vector_store %arg8[%c0_20, %c0_21, %c0_22], %31 {strides = array<i32>} : memref<1x16x128xf32, #tpu.memory_space<vmem>>, vector<1x16x128xf32>,
      %cst_23 = arith.constant dense<0.000000e+00> : vector<128xf32>
      %32 = vector.multi_reduction <add>, %28, %cst_23 [0] : vector<16x128xf32> to vector<128xf32>
      %33 = vector.shape_cast %32 : vector<128xf32> to vector<1x128xf32>
      %34 = vector.shape_cast %33 : vector<1x128xf32> to vector<1x128xf32>
      %35 = vector.broadcast %34 : vector<1x128xf32> to vector<8x128xf32>
      %c0_24 = arith.constant 0 : index
      %c0_25 = arith.constant 0 : index
      %c0_26 = arith.constant 0 : index
      %c0_27 = arith.constant 0 : index
      %36 = vector.load %arg9[%c0_24, %c0_25, %c0_26, %c0_27] : memref<1x1x8x128xf32, #tpu.memory_space<vmem>>, vector<1x1x8x128xf32>
      %37 = vector.shape_cast %36 : vector<1x1x8x128xf32> to vector<8x128xf32>
      %38 = vector.shape_cast %35 : vector<8x128xf32> to vector<1x1x8x128xf32>
      tpu.vector_store %arg9[%c0_24, %c0_25, %c0_26, %c0_27], %38 {strides = array<i32>} : memref<1x1x8x128xf32, #tpu.memory_space<vmem>>, vector<1x1x8x128xf32>,
    } else {
    }
    return
  }
  func.func @transform_0(%arg0: i32, %arg1: i32, %arg2: i32) -> (i32, i32, i32) {
    %c0_i32 = arith.constant 0 : i32
    return %arg0, %arg1, %arg2 : i32, i32, i32
  }
  func.func @transform_1(%arg0: i32, %arg1: i32, %arg2: i32) -> (i32, i32, i32) {
    %c0_i32 = arith.constant 0 : i32
    %c0_i32_0 = arith.constant 0 : i32
    %c0_i32_1 = arith.constant 0 : i32
    return %arg0, %c0_i32, %c0_i32_0 : i32, i32, i32
  }
  func.func @transform_2(%arg0: i32, %arg1: i32, %arg2: i32) -> (i32, i32) {
    %c0_i32 = arith.constant 0 : i32
    %c0_i32_0 = arith.constant 0 : i32
    %c0_i32_1 = arith.constant 0 : i32
    return %c0_i32, %c0_i32_0 : i32, i32
  }
  func.func @transform_3(%arg0: i32, %arg1: i32, %arg2: i32) -> (i32, i32) {
    %c0_i32 = arith.constant 0 : i32
    %c0_i32_0 = arith.constant 0 : i32
    %c0_i32_1 = arith.constant 0 : i32
    return %c0_i32, %c0_i32_0 : i32, i32
  }
  func.func @transform_4(%arg0: i32, %arg1: i32, %arg2: i32) -> i32 {
    %c0_i32 = arith.constant 0 : i32
    %c0_i32_0 = arith.constant 0 : i32
    return %c0_i32 : i32
  }
  func.func @transform_5(%arg0: i32, %arg1: i32, %arg2: i32) -> (i32, i32, i32) {
    %c0_i32 = arith.constant 0 : i32
    %c0_i32_0 = arith.constant 0 : i32
    return %arg0, %arg1, %c0_i32 : i32, i32, i32
  }
  func.func @transform_6(%arg0: i32, %arg1: i32, %arg2: i32) -> (i32, i32, i32, i32) {
    %c0_i32 = arith.constant 0 : i32
    %c0_i32_0 = arith.constant 0 : i32
    %c0_i32_1 = arith.constant 0 : i32
    return %arg0, %arg1, %c0_i32, %c0_i32_0 : i32, i32, i32, i32
  }
}

module attributes {stable_mosaic.version = 11 : i64} {
  func.func @_gcn_fused_kernel(%arg0: i32, %arg1: i32, %arg2: i32, %arg3: memref<1x16x16xf32, #tpu.memory_space<vmem>>, %arg4: memref<1x16x128xf32, #tpu.memory_space<vmem>>, %arg5: memref<128x128xf32, #tpu.memory_space<vmem>>, %arg6: memref<1x128xf32, #tpu.memory_space<vmem>>, %arg7: memref<1xf32, #tpu.memory_space<smem>>, %arg8: memref<1x16x128xf32, #tpu.memory_space<vmem>>, %arg9: memref<1x1x8x128xf32, #tpu.memory_space<vmem>>, %arg10: memref<16x128xf32, #tpu.memory_space<vmem>>) attributes {dimension_semantics = [#tpu.dimension_semantics<parallel>, #tpu.dimension_semantics<parallel>, #tpu.dimension_semantics<arbitrary>], iteration_bounds = array<i64: 2, 1, 1>, scalar_prefetch = 0 : i64, scratch_operands = 1 : i64, tpu.core_type = #tpu.core_type<tc>, window_params = [{transform_indices = @transform_0, window_bounds = array<i64: 1, 16, 16>}, {transform_indices = @transform_1, window_bounds = array<i64: 1, 16, 128>}, {pipeline_mode = #tpu.pipeline_mode<synchronous>, transform_indices = @transform_2, window_bounds = array<i64: 128, 128>}, {pipeline_mode = #tpu.pipeline_mode<synchronous>, transform_indices = @transform_3, window_bounds = array<i64: 1, 128>}, {transform_indices = @transform_4, window_bounds = array<i64: 1>}, {transform_indices = @transform_5, window_bounds = array<i64: 1, 16, 128>}, {transform_indices = @transform_6, window_bounds = array<i64: 1, 1, 8, 128>}]} {
    %c0_i32 = arith.constant 0 : i32
    %0 = arith.cmpi eq, %arg2, %c0_i32 : i32
    %1 = arith.extui %0 : i1 to i32
    %c0_i32_0 = arith.constant 0 : i32
    %2 = arith.cmpi ne, %1, %c0_i32_0 : i32
    scf.if %2 {
      %cst_14 = arith.constant 0.000000e+00 : f32
      %19 = vector.broadcast %cst_14 : f32 to vector<16x128xf32>
      %c0_15 = arith.constant 0 : index
      %c0_16 = arith.constant 0 : index
      %20 = vector.load %arg10[%c0_15, %c0_16] : memref<16x128xf32, #tpu.memory_space<vmem>>, vector<16x128xf32>
      tpu.vector_store %arg10[%c0_15, %c0_16], %19 {strides = array<i32>} : memref<16x128xf32, #tpu.memory_space<vmem>>, vector<16x128xf32>,
    } else {
    }
    %c0 = arith.constant 0 : index
    %c0_1 = arith.constant 0 : index
    %c0_2 = arith.constant 0 : index
    %3 = vector.load %arg3[%c0, %c0_1, %c0_2] : memref<1x16x16xf32, #tpu.memory_space<vmem>>, vector<1x16x16xf32>
    %4 = vector.shape_cast %3 : vector<1x16x16xf32> to vector<16x16xf32>
    %c16_i32 = arith.constant 16 : i32
    %5 = arith.muli %arg2, %c16_i32 : i32
    %6 = tpu.assume_multiple %5, 16 : i32
    %c0_3 = arith.constant 0 : index
    %7 = arith.index_cast %6 : i32 to index
    %c0_4 = arith.constant 0 : index
    %8 = vector.load %arg4[%c0_3, %7, %c0_4] : memref<1x16x128xf32, #tpu.memory_space<vmem>>, vector<1x16x128xf32>
    %9 = vector.shape_cast %8 : vector<1x16x128xf32> to vector<16x128xf32>
    %c0_5 = arith.constant 0 : index
    %c0_6 = arith.constant 0 : index
    %10 = vector.load %arg5[%c0_5, %c0_6] : memref<128x128xf32, #tpu.memory_space<vmem>>, vector<128x128xf32>
    %cst = arith.constant dense<0.000000e+00> : vector<16x128xf32>
    %11 = tpu.matmul %9, %10, %cst {dimension_numbers = #tpu.dot_dimension_numbers<[1], [0], [0], [1], [0, 0, 1, 1], [], []>} : vector<16x128xf32>, vector<128x128xf32>, vector<16x128xf32> -> vector<16x128xf32>
    %c0_7 = arith.constant 0 : index
    %c0_8 = arith.constant 0 : index
    %12 = vector.load %arg10[%c0_7, %c0_8] : memref<16x128xf32, #tpu.memory_space<vmem>>, vector<16x128xf32>
    %cst_9 = arith.constant dense<0.000000e+00> : vector<16x128xf32>
    %13 = tpu.matmul %4, %11, %cst_9 {dimension_numbers = #tpu.dot_dimension_numbers<[1], [0], [0], [1], [0, 0, 1, 1], [], []>} : vector<16x16xf32>, vector<16x128xf32>, vector<16x128xf32> -> vector<16x128xf32>
    %14 = arith.addf %12, %13 : vector<16x128xf32>
    %c0_10 = arith.constant 0 : index
    %c0_11 = arith.constant 0 : index
    %15 = vector.load %arg10[%c0_10, %c0_11] : memref<16x128xf32, #tpu.memory_space<vmem>>, vector<16x128xf32>
    tpu.vector_store %arg10[%c0_10, %c0_11], %14 {strides = array<i32>} : memref<16x128xf32, #tpu.memory_space<vmem>>, vector<16x128xf32>,
    %c0_i32_12 = arith.constant 0 : i32
    %16 = arith.cmpi eq, %arg2, %c0_i32_12 : i32
    %17 = arith.extui %16 : i1 to i32
    %c0_i32_13 = arith.constant 0 : i32
    %18 = arith.cmpi ne, %17, %c0_i32_13 : i32
    scf.if %18 {
      %c0_14 = arith.constant 0 : index
      %19 = memref.load %arg7[%c0_14] : memref<1xf32, #tpu.memory_space<smem>>
      %c0_15 = arith.constant 0 : index
      %c0_16 = arith.constant 0 : index
      %20 = vector.load %arg10[%c0_15, %c0_16] : memref<16x128xf32, #tpu.memory_space<vmem>>, vector<16x128xf32>
      %c0_17 = arith.constant 0 : index
      %c0_18 = arith.constant 0 : index
      %21 = vector.load %arg6[%c0_17, %c0_18] : memref<1x128xf32, #tpu.memory_space<vmem>>, vector<1x128xf32>
      %22 = vector.broadcast %21 : vector<1x128xf32> to vector<16x128xf32>
      %23 = arith.addf %20, %22 : vector<16x128xf32>
      %cst_19 = arith.constant 0.000000e+00 : f32
      %24 = vector.broadcast %cst_19 : f32 to vector<16x128xf32>
      %25 = arith.cmpf oge, %23, %24 : vector<16x128xf32>
      %26 = vector.broadcast %19 : f32 to vector<16x128xf32>
      %27 = arith.mulf %26, %23 : vector<16x128xf32>
      %28 = arith.select %25, %23, %27 : vector<16x128xi1>, vector<16x128xf32>
      %c0_20 = arith.constant 0 : index
      %c0_21 = arith.constant 0 : index
      %c0_22 = arith.constant 0 : index
      %29 = vector.load %arg8[%c0_20, %c0_21, %c0_22] : memref<1x16x128xf32, #tpu.memory_space<vmem>>, vector<1x16x128xf32>
      %30 = vector.shape_cast %29 : vector<1x16x128xf32> to vector<16x128xf32>
      %31 = vector.shape_cast %28 : vector<16x128xf32> to vector<1x16x128xf32>
      tpu.vector_store %arg8[%c0_20, %c0_21, %c0_22], %31 {strides = array<i32>} : memref<1x16x128xf32, #tpu.memory_space<vmem>>, vector<1x16x128xf32>,
      %cst_23 = arith.constant dense<0.000000e+00> : vector<128xf32>
      %32 = vector.multi_reduction <add>, %28, %cst_23 [0] : vector<16x128xf32> to vector<128xf32>
      %33 = vector.shape_cast %32 : vector<128xf32> to vector<1x128xf32>
      %34 = vector.shape_cast %33 : vector<1x128xf32> to vector<1x128xf32>
      %35 = vector.broadcast %34 : vector<1x128xf32> to vector<8x128xf32>
      %c0_24 = arith.constant 0 : index
      %c0_25 = arith.constant 0 : index
      %c0_26 = arith.constant 0 : index
      %c0_27 = arith.constant 0 : index
      %36 = vector.load %arg9[%c0_24, %c0_25, %c0_26, %c0_27] : memref<1x1x8x128xf32, #tpu.memory_space<vmem>>, vector<1x1x8x128xf32>
      %37 = vector.shape_cast %36 : vector<1x1x8x128xf32> to vector<8x128xf32>
      %38 = vector.shape_cast %35 : vector<8x128xf32> to vector<1x1x8x128xf32>
      tpu.vector_store %arg9[%c0_24, %c0_25, %c0_26, %c0_27], %38 {strides = array<i32>} : memref<1x1x8x128xf32, #tpu.memory_space<vmem>>, vector<1x1x8x128xf32>,
    } else {
    }
    return
  }
  func.func @transform_0(%arg0: i32, %arg1: i32, %arg2: i32) -> (i32, i32, i32) {
    %c0_i32 = arith.constant 0 : i32
    return %arg0, %arg1, %arg2 : i32, i32, i32
  }
  func.func @transform_1(%arg0: i32, %arg1: i32, %arg2: i32) -> (i32, i32, i32) {
    %c0_i32 = arith.constant 0 : i32
    %c0_i32_0 = arith.constant 0 : i32
    %c0_i32_1 = arith.constant 0 : i32
    return %arg0, %c0_i32, %c0_i32_0 : i32, i32, i32
  }
  func.func @transform_2(%arg0: i32, %arg1: i32, %arg2: i32) -> (i32, i32) {
    %c0_i32 = arith.constant 0 : i32
    %c0_i32_0 = arith.constant 0 : i32
    %c0_i32_1 = arith.constant 0 : i32
    return %c0_i32, %c0_i32_0 : i32, i32
  }
  func.func @transform_3(%arg0: i32, %arg1: i32, %arg2: i32) -> (i32, i32) {
    %c0_i32 = arith.constant 0 : i32
    %c0_i32_0 = arith.constant 0 : i32
    %c0_i32_1 = arith.constant 0 : i32
    return %c0_i32, %c0_i32_0 : i32, i32
  }
  func.func @transform_4(%arg0: i32, %arg1: i32, %arg2: i32) -> i32 {
    %c0_i32 = arith.constant 0 : i32
    %c0_i32_0 = arith.constant 0 : i32
    return %c0_i32 : i32
  }
  func.func @transform_5(%arg0: i32, %arg1: i32, %arg2: i32) -> (i32, i32, i32) {
    %c0_i32 = arith.constant 0 : i32
    %c0_i32_0 = arith.constant 0 : i32
    return %arg0, %arg1, %c0_i32 : i32, i32, i32
  }
  func.func @transform_6(%arg0: i32, %arg1: i32, %arg2: i32) -> (i32, i32, i32, i32) {
    %c0_i32 = arith.constant 0 : i32
    %c0_i32_0 = arith.constant 0 : i32
    %c0_i32_1 = arith.constant 0 : i32
    return %arg0, %arg1, %c0_i32, %c0_i32_0 : i32, i32, i32, i32
  }
}

</mosaic_0001>

<bundles_post_ra>
// kernel: dgi_node22_forward.2
= control target key start
LH: loop header
LB: loop body
LE: loop exit
PB: predicated region body
PF: predicated region fallthrough
CT: control target
= control target key end

     0   :  { %s1069_s0 = inlined_call_operand.vmem [shape: f32[2,16,16], index: 0, kind: input, shape index: {}]   ;;  %s1070_s1 = inlined_call_operand.vmem [shape: f32[2,16,32], index: 1, kind: input, shape index: {}]   ;;  %s1071_s2 = inlined_call_operand.vmem [shape: f32[32,128], index: 2, kind: input, shape index: {}]   ;;  %s1072_s3 = inlined_call_operand.vmem [shape: f32[1,128], index: 3, kind: input, shape index: {}]   ;;  %s1073_s4 = inlined_call_operand.<no memory space> [shape: f32[1], index: 4, kind: input, shape index: {}]   ;;  %s1074_s5 = inlined_call_operand.vmem [shape: f32[2,16,128], index: 5, kind: output, shape index: {0}]   ;;  %s1075_s6 = inlined_call_operand.hbm [shape: f32[2,1,8,128], index: 6, kind: output, shape index: {1}]  }
   0x1   :  { %12 = sst [smem:[#allocation3]] %s1073_s4 }
   0x2   :  { %13 = vsyncpa [#allocation5], 0 }
   0x3   :  { %15 = vsyncpa [#allocation5 + $0x1], 0  ;;  %s944_s23 = smov 0   ;;  %s946_s24 = smov 0  }
   0x4   :  { %s948_s25 = smov 0   ;;  %s950_s26 = smov 0  }
   0x5   :  { %s952_s27 = smov 0   ;;  %s954_s28 = smov 0  }
   0x6 LB: > { %s720_s4 = sadd.s32 4294967295, %s903_s28   ;;  %s721_s29 = sadd.s32 4294967294, %s903_s28   ;;  %s903_s28 = sphi %s954_s28, %s21_s28   ;;  %s899_s27 = sphi %s952_s27, %s1082_s27   ;;  %s895_s26 = sphi %s950_s26, %s1081_s26   ;;  %s891_s25 = sphi %s948_s25, %s1080_s25   ;;  %s887_s24 = sphi %s946_s24, %s1079_s24   ;;  %s883_s23 = sphi %s944_s23, %s1078_s23  }
   0x7   : > { %s40_s30 = sadd.s32 1, %s899_s27  ;;  %s196_s7 = sadd.s32 1, %s891_s25 }
   0x8   : > { %p42_p0 = scmp.ge.s32.totalorder %s40_s30, 2  ;;  %p206_p1 = scmp.ne.s32.totalorder %s891_s25, %s887_s24 }
   0x9   : > { %p207_p2 = scmp.eq.s32.totalorder %s720_s4, 1  ;;  %p212_p3 = scmp.ne.s32.totalorder %s887_s24, %s883_s23 }
   0xa   : > { %s1084_s30 = smov (%p42_p0, %s40_s30), 0  ;;  %p213_p5 = scmp.eq.s32.totalorder %s721_s29, 1 }
   0xb   : > { %p984_p4 = por %p207_p2, %p206_p1  ;;  %s191_s9 = ssub.s32 %s899_s27, %s1084_s30 }
   0xc   : > { %p724_p6 = scmp.ge.s32.totalorder %s903_s28, 1  ;;  %p194_p7 = scmp.eq.s32.totalorder %s191_s9, 0 }
   0xd   : > { %p991_p8 = por %p213_p5, %p212_p3  ;;  %p264_p9 = scmp.lt.s32.totalorder %s903_s28, 3 }
   0xe   : > { %s997_s11 = scalar_select %p194_p7, %s891_s25, %s196_s7  }
   0xf   : > { %p265_p10 = pnand %p724_p6, %p264_p9 }
  0x10   : > { %p316_p11 = scmp.lt.s32.totalorder (!%p265_p10), %s895_s26, 1  ;;  %s532_s13 = sld [smem:[#allocation3]] (!%p265_p10) }
  0x11   : > { %268 = sbr.rel (%p265_p10) target bundleno = 455 (0x1c7), region = 40  ;;  %s312_s19 = sand.u32 (!%p265_p10), 1, %s887_s24  }
  0x12   : > { %s725_s20 = sshll.u32 (!%p265_p10), %s312_s19, 3  ;;  %s738_s22 = sshll.u32 (!%p265_p10), %s895_s26, 7 }
  0x13   : > { %s587_s9 = scalar_lea.hbm (!%p265_p10), %s1075_s6, %s738_s22  ;;  %s905_s14 = smov (!%p265_p10), [#allocation4]  }
  0x14   : > { %s831_s15 = sshll.u32 (!%p265_p10), %s905_s14, 4  ;;  %s832_s15 = int_to_ptr.vmem [resolvable:$false] %s831_s15 }
  0x16   : > { %v358_v0 = vld [vmem:[%s1071_s2 + $0x18] sm:$0xff]  ;;  %v357_v1 = vld [vmem:[%s1071_s2 + $0x10] sm:$0xff]  ;;  %v356_v2 = vld [vmem:[%s1071_s2 + $0x8] sm:$0xff]  ;;  %s317_s18 = scalar_select %p316_p11, %s895_s26, 1  ;;  %vm359_vm0 = vcmask 261120   ;;  %vm443_vm1 = vcmask 130048   ;;  %v546_v12 = vstv %s532_s13 }
  0x17   : > { %754 = vmatprep.subr.mxu0 %v358_v0  ;;  %v355_v3 = vld [vmem:[%s1071_s2] sm:$0xff]  ;;  %s833_s26 = scalar_lea.vmem %s832_s15, 256 }
  0x18   : > { %755 = vmatpush3.msra.mxu0 %v358_v0  ;;  %s1013_s21 = sshll.u32 %s317_s18, 4  ;;  %v736_v10 = vld [vmem:[%s1072_s3] ss:$0 sm:$0xff] }
  0x19   : > { %756 = vmatprep.subr.mxu0 %v357_v1  ;;  %s332_s29 = scalar_lea.vmem %s1070_s1, %s1013_s21  ;;  %s326_s12 = scalar_lea.vmem %s1069_s0, %s1013_s21 }
  0x1a   : > { %757 = vmatpush3.msra.mxu0 %v357_v1  ;;  %v353_v4 = vld [vmem:[%s332_s29] sm:$0xff]  ;;  %v354_v5 = vld [vmem:[%s332_s29 + $0x8] sm:$0xff]  ;;  %s341_s18 = scalar_lea.vmem %s1074_s5, %s1013_s21  ;;  %s314_s21 = scalar_lea.vmem [#allocation4], %s725_s20 }
  0x1b   : > { %758 = vmatprep.subr.mxu0 %v356_v2  ;;  %762 = vmatprep.mubr.msk.f32.mxu0 %vm359_vm0, %v353_v4  ;;  %v349_v6 = vld [vmem:[%s326_s12] sm:$0xff]  ;;  %v350_v9 = vld [vmem:[%s326_s12 + $0x8] sm:$0xff]  ;;  %s589_s4 = sshll.u32 %s314_s21, 4  ;;  %s571_s12 = scalar_lea.sflag [#allocation5], %s312_s19  ;;  %s590_s4 = int_to_ptr.vmem [resolvable:$true] %s589_s4 }
  0x1c   : > { %759 = vmatpush3.msra.mxu0 %v356_v2  ;;  %769 = vmatprep.mubr.msk.f32.mxu1 %vm443_vm1, %v349_v6  ;;  %s827_s13 = scalar_lea.vmem %s590_s4, 128  ;;  %p834_p1 = scmp.lt.s32.totalorder %s590_s4, %s832_s15 }
  0x1d   : > { %760 = vmatprep.subr.mxu0 %v355_v3  ;;  %p828_p12 = scmp.ne.s32.totalorder %s590_s4, %s827_s13  ;;  %p835_p2 = scmp.lt.s32.totalorder %s833_s26, %s827_s13 }
  0x1e   : > { %761 = vmatpush3.msra.mxu0 %v355_v3 }
  0x1f   : > { %763 = vmatmul.mubr.msk.f32.vlgmr.msra.gmra.mxu0 %vm359_vm0, %v354_v5  ;;  %p829_p13 = pnand %p828_p12, %p984_p4  ;;  %p836_p3 = por %p835_p2, %p834_p1 }
  0x21   : > { %p830_p0 = pneg %p829_p13 }
  0x23   : > { %p837_p5 = pnand %p836_p3, %p830_p0 }
  0xdf   : > { %v764_v7 = vpop.f32.mrf.mxu0 }
  0xe0   : > { %765 = vmatprep.subr.mxu1 %v764_v7 }
  0xe1   : > { %v432_v8 = vpop.f32.mrf.mxu0  ;;  %766 = vmatpush3.msra.mxu1 %v764_v7 }
  0xe2   : > { %767 = vmatprep.subr.mxu1 %v432_v8 }
  0xe3   : > { %768 = vmatpush3.msra.mxu1 %v432_v8 }
  0xe4   : > { %770 = vmatmul.mubr.msk.f32.vlgmr.msra.gmra.mxu1 %vm443_vm1, %v350_v9 }
 0x1a4   : > { %v771_v11 = vpop.f32.mrf.mxu1 }
 0x1a5   : > { %v543_v13 = vadd.f32 %v771_v11, %v736_v10 }
 0x1a6   : > { %v516_v14 = vpop.f32.mrf.mxu1 }
 0x1a7   : > { %vm545_vm2 = vcmp.ge.f32.partialorder %v543_v13, 0.0  ;;  %v548_v15 = vmul.f32 %v546_v12, %v543_v13  ;;  %v542_v16 = vadd.f32 %v736_v10, %v516_v14 }
 0x1a9   : > { %v550_v17 = vsel %vm545_vm2, %v543_v13, %v548_v15  ;;  %vm544_vm3 = vcmp.ge.f32.partialorder %v542_v16, 0.0  ;;  %v547_v18 = vmul.f32 %v546_v12, %v542_v16 }
 0x1aa   : > { %552 = vst [vmem:[%s341_s18 + $0x8] sm:$0xff] %v550_v17 }
 0x1ab   : > { %v549_v19 = vsel %vm544_vm3, %v542_v16, %v547_v18 }
 0x1ac   : > { %551 = vst [vmem:[%s341_s18] sm:$0xff] %v549_v19  ;;  %v553_v20 = vadd.f32 %v550_v17, %v549_v19 }
 0x1ae   : > { %v554_v21 = vrot.slane %v553_v20, 4 }
 0x1b0   : > { %v555_v22 = vadd.f32 %v554_v21, %v553_v20 }
 0x1b2   : > { %v556_v23 = vrot.slane %v555_v22, 2 }
 0x1b4   : > { %v557_v24 = vadd.f32 %v556_v23, %v555_v22 }
 0x1b6   : > { %v558_v25 = vrot.slane %v557_v24, 1 }
 0x1b8   : > { %v559_v26 = vadd.f32 %v558_v25, %v557_v24 }
 0x1ba   : > { %560 = vst [vmem:[%s314_s21] sm:$0xff] %v559_v26 }
 0x1bb   : > { %840 = shalt.err (!%p837_p5)
}
 0x1bc   : > { %s841_s16 = scalar_lea.hbm %s587_s9, 128  ;;  %s845_s19 = scalar_lea.hbm %s1075_s6, 256 }
 0x1bd   : > { %p842_p6 = scmp.ne.s32.totalorder %s587_s9, %s841_s16  ;;  %p846_p10 = scmp.lt.s32.totalorder %s587_s9, %s1075_s6 }
 0x1be   : > { %p847_p11 = scmp.lt.s32.totalorder %s845_s19, %s841_s16 }
 0x1bf   : > { %p843_p7 = pnand %p842_p6, %p984_p4 }
 0x1c0   : > { %p848_p12 = por %p847_p11, %p846_p10 }
 0x1c1   : > { %p844_p9 = pneg %p843_p7 }
 0x1c3   : > { %p849_p13 = pnand %p848_p12, %p844_p9 }
 0x1c5   : > { %852 = shalt.err (!%p849_p13)
}
 0x1c6   : > { %772 = dma.vmem_to_hbm [thread:$0]  (%p984_p4), %s590_s4, 128, %s587_s9, %s571_s12  }
 0x1c7 PF: > { %p778_p0 = scmp.ge.s32.totalorder %s903_s28, 2  ;;  %s613_s21 = sand.u32 1, %s883_s23  }
 0x1c8   : > { %s614_s29 = scalar_lea.sflag [#allocation5], %s613_s21 }
 0x1c9   : > { %p775_p1 = pnand %p778_p0, %p991_p8 }
 0x1cb   : > { %p776_p2 = pneg %p775_p1 }
 0x1cd   : > { %878 = dma.done.wait (%p776_p2), %s614_s29, 128  }
 0x1ce   : > { %880 = vsyncadd (%p776_p2), %s614_s29, 4294967168  ;;  %s21_s28 = sadd.s32 1, %s903_s28   ;;  %s1078_s23 = smov %s887_s24 }
 0x1cf   : > { %p18_p3 = scmp.ge.s32.totalorder %s21_s28, 4   ;;  %s1079_s24 = smov %s891_s25 }
 0x1d0   : > { %s1080_s25 = smov %s997_s11  ;;  %s1081_s26 = smov %s899_s27 }
 0x1d1   : > { %s1082_s27 = smov %s1084_s30  ;;  %20 = sbr.rel (!%p18_p3) target bundleno = 6 (0x6), region = 99 }
 0x1d6   :  { %619 = vsyncpa [#allocation5], 1 }
 0x1d7   :  { %621 = vsyncpa [#allocation5 + $0x1], 1 }

// kernel: dgi_node22_forward.3
= control target key start
LH: loop header
LB: loop body
LE: loop exit
PB: predicated region body
PF: predicated region fallthrough
CT: control target
= control target key end

     0   :  { %s1163_s0 = inlined_call_operand.vmem [shape: f32[2,16,16], index: 0, kind: input, shape index: {}]   ;;  %s1164_s1 = inlined_call_operand.vmem [shape: f32[2,16,128], index: 1, kind: input, shape index: {}]   ;;  %s1165_s2 = inlined_call_operand.vmem [shape: f32[128,128], index: 2, kind: input, shape index: {}]   ;;  %s1166_s3 = inlined_call_operand.vmem [shape: f32[1,128], index: 3, kind: input, shape index: {}]   ;;  %s1167_s4 = inlined_call_operand.<no memory space> [shape: f32[1], index: 4, kind: input, shape index: {}]   ;;  %s1168_s5 = inlined_call_operand.hbm [shape: f32[2,16,128], index: 5, kind: output, shape index: {0}]   ;;  %s1169_s6 = inlined_call_operand.vmem [shape: f32[2,1,8,128], index: 6, kind: output, shape index: {1}]  }
   0x1   :  { %12 = sst [smem:[#allocation3]] %s1167_s4 }
   0x2   :  { %13 = vsyncpa [#allocation5], 0 }
   0x3   :  { %15 = vsyncpa [#allocation5 + $0x1], 0  ;;  %s980_s23 = smov 0   ;;  %s982_s24 = smov 0  }
   0x4   :  { %s984_s25 = smov 0   ;;  %s986_s26 = smov 0  }
   0x5   :  { %s988_s27 = smov 0   ;;  %s990_s28 = smov 0  }
   0x6 LB: > { %s718_s4 = sadd.s32 4294967295, %s937_s28   ;;  %s719_s29 = sadd.s32 4294967294, %s937_s28   ;;  %s937_s28 = sphi %s990_s28, %s21_s28   ;;  %s933_s27 = sphi %s988_s27, %s1176_s27   ;;  %s929_s26 = sphi %s986_s26, %s1175_s26   ;;  %s925_s25 = sphi %s984_s25, %s1174_s25   ;;  %s921_s24 = sphi %s982_s24, %s1173_s24   ;;  %s917_s23 = sphi %s980_s23, %s1172_s23  }
   0x7   : > { %s40_s30 = sadd.s32 1, %s933_s27  ;;  %s168_s7 = sadd.s32 1, %s925_s25 }
   0x8   : > { %p42_p0 = scmp.ge.s32.totalorder %s40_s30, 2  ;;  %p178_p1 = scmp.ne.s32.totalorder %s925_s25, %s921_s24 }
   0x9   : > { %p179_p2 = scmp.eq.s32.totalorder %s718_s4, 1  ;;  %p184_p3 = scmp.ne.s32.totalorder %s921_s24, %s917_s23 }
   0xa   : > { %s1178_s30 = smov (%p42_p0, %s40_s30), 0  ;;  %p185_p5 = scmp.eq.s32.totalorder %s719_s29, 1 }
   0xb   : > { %p1020_p4 = por %p179_p2, %p178_p1  ;;  %s163_s9 = ssub.s32 %s933_s27, %s1178_s30 }
   0xc   : > { %p722_p6 = scmp.ge.s32.totalorder %s937_s28, 1  ;;  %p166_p7 = scmp.eq.s32.totalorder %s163_s9, 0 }
   0xd   : > { %p1027_p8 = por %p185_p5, %p184_p3  ;;  %p264_p9 = scmp.lt.s32.totalorder %s937_s28, 3 }
   0xe   : > { %s1033_s11 = scalar_select %p166_p7, %s925_s25, %s168_s7  }
   0xf   : > { %p265_p10 = pnand %p722_p6, %p264_p9 }
  0x10   : > { %p314_p11 = scmp.lt.s32.totalorder (!%p265_p10), %s929_s26, 1  ;;  %s301_s13 = sand.u32 (!%p265_p10), 1, %s921_s24  }
  0x11   : > { %268 = sbr.rel (%p265_p10) target bundleno = 477 (0x1dd), region = 40  ;;  %s723_s14 = sshll.u32 (!%p265_p10), %s301_s13, 4 }
  0x12   : > { %s739_s19 = sshll.u32 (!%p265_p10), %s929_s26, 8  ;;  %s939_s9 = smov (!%p265_p10), [#allocation4]  }
  0x13   : > { %s1112_s4 = scalar_lea.hbm (!%p265_p10), %s1168_s5, %s739_s19 }
  0x16   : > { %v366_v0 = vld [vmem:[%s1165_s2 + $0x78] sm:$0xff]  ;;  %v365_v1 = vld [vmem:[%s1165_s2 + $0x70] sm:$0xff]  ;;  %v364_v2 = vld [vmem:[%s1165_s2 + $0x68] sm:$0xff]  ;;  %s1046_s18 = scalar_select %p314_p11, %s929_s26, 1  ;;  %vm444_vm0 = vcmask 130048  }
  0x17   : > { %762 = vmatprep.subr.mxu0 %v366_v0  ;;  %v363_v3 = vld [vmem:[%s1165_s2 + $0x60] sm:$0xff]  ;;  %v362_v4 = vld [vmem:[%s1165_s2 + $0x58] sm:$0xff]  ;;  %v361_v6 = vld [vmem:[%s1165_s2 + $0x50] sm:$0xff]  ;;  %s1114_s26 = scalar_lea.sflag [#allocation5], %s301_s13 }
  0x18   : > { %763 = vmatpush3.msra.mxu0 %v366_v0  ;;  %s737_s21 = sshll.u32 %s1046_s18, 4  ;;  %v360_v7 = vld [vmem:[%s1165_s2 + $0x48] sm:$0xff]  ;;  %v359_v8 = vld [vmem:[%s1165_s2 + $0x40] sm:$0xff]  ;;  %v358_v9 = vld [vmem:[%s1165_s2 + $0x38] sm:$0xff] }
  0x19   : > { %764 = vmatprep.subr.mxu0 %v365_v1  ;;  %s1057_s29 = scalar_lea.vmem %s1164_s1, %s737_s21  ;;  %v357_v10 = vld [vmem:[%s1165_s2 + $0x30] sm:$0xff]  ;;  %v356_v11 = vld [vmem:[%s1165_s2 + $0x28] sm:$0xff]  ;;  %v355_v12 = vld [vmem:[%s1165_s2 + $0x20] sm:$0xff]  ;;  %s324_s12 = scalar_lea.vmem %s1163_s0, %s737_s21 }
  0x1a   : > { %765 = vmatpush3.msra.mxu0 %v365_v1  ;;  %v349_v5 = vld [vmem:[%s1057_s29] sm:$0xff]  ;;  %v354_v13 = vld [vmem:[%s1165_s2 + $0x18] sm:$0xff]  ;;  %v353_v14 = vld [vmem:[%s1165_s2 + $0x10] sm:$0xff]  ;;  %s303_s21 = scalar_lea.vmem [#allocation4], %s723_s14 }
  0x1b   : > { %766 = vmatprep.subr.mxu0 %v364_v2  ;;  %794 = vmatprep.mubr.f32.mxu0 %v349_v5  ;;  %v352_v15 = vld [vmem:[%s1165_s2 + $0x8] sm:$0xff]  ;;  %v351_v16 = vld [vmem:[%s1165_s2] sm:$0xff]  ;;  %s585_s17 = sshll.u32 %s303_s21, 4  ;;  %s1107_s17 = int_to_ptr.vmem [resolvable:$true] %s585_s17 }
  0x1c   : > { %767 = vmatpush3.msra.mxu0 %v364_v2  ;;  %v350_v17 = vld [vmem:[%s1057_s29 + $0x8] sm:$0xff]  ;;  %v345_v18 = vld [vmem:[%s324_s12] sm:$0xff]  ;;  %s533_s29 = sld [smem:[#allocation3]]  ;;  %s861_s7 = scalar_lea.vmem %s1107_s17, 256 }
  0x1d   : > { %768 = vmatprep.subr.mxu0 %v363_v3  ;;  %801 = vmatprep.mubr.msk.f32.mxu1 %vm444_vm0, %v345_v18  ;;  %v346_v21 = vld [vmem:[%s324_s12 + $0x8] sm:$0xff]  ;;  %v731_v22 = vld [vmem:[%s1166_s3] ss:$0 sm:$0xff]  ;;  %p862_p12 = scmp.ne.s32.totalorder %s1107_s17, %s861_s7  ;;  %s865_s12 = sshll.u32 %s939_s9, 4  ;;  %s866_s12 = int_to_ptr.vmem [resolvable:$false] %s865_s12 }
  0x1e   : > { %769 = vmatpush3.msra.mxu0 %v363_v3  ;;  %p868_p1 = scmp.lt.s32.totalorder %s1107_s17, %s866_s12 }
  0x1f   : > { %770 = vmatprep.subr.mxu0 %v362_v4  ;;  %p863_p13 = pnand %p862_p12, %p1020_p4 }
  0x20   : > { %771 = vmatpush3.msra.mxu0 %v362_v4 }
  0x21   : > { %772 = vmatprep.subr.mxu0 %v361_v6  ;;  %p864_p0 = pneg %p863_p13 }
  0x22   : > { %773 = vmatpush3.msra.mxu0 %v361_v6  ;;  %v547_v24 = vstv %s533_s29  ;;  %s867_s29 = scalar_lea.vmem %s866_s12, 512 }
  0x23   : > { %774 = vmatprep.subr.mxu0 %v360_v7  ;;  %p869_p2 = scmp.lt.s32.totalorder %s867_s29, %s861_s7 }
  0x24   : > { %775 = vmatpush3.msra.mxu0 %v360_v7 }
  0x25   : > { %776 = vmatprep.subr.mxu0 %v359_v8  ;;  %p870_p3 = por %p869_p2, %p868_p1 }
  0x26   : > { %777 = vmatpush3.msra.mxu0 %v359_v8 }
  0x27   : > { %778 = vmatprep.subr.mxu0 %v358_v9  ;;  %p871_p5 = pnand %p870_p3, %p864_p0 }
  0x28   : > { %779 = vmatpush3.msra.mxu0 %v358_v9 }
  0x29   : > { %780 = vmatprep.subr.mxu0 %v357_v10 }
  0x2a   : > { %781 = vmatpush3.msra.mxu0 %v357_v10 }
  0x2b   : > { %782 = vmatprep.subr.mxu0 %v356_v11 }
  0x2c   : > { %783 = vmatpush3.msra.mxu0 %v356_v11 }
  0x2d   : > { %784 = vmatprep.subr.mxu0 %v355_v12 }
  0x2e   : > { %785 = vmatpush3.msra.mxu0 %v355_v12 }
  0x2f   : > { %786 = vmatprep.subr.mxu0 %v354_v13 }
  0x30   : > { %787 = vmatpush3.msra.mxu0 %v354_v13 }
  0x31   : > { %788 = vmatprep.subr.mxu0 %v353_v14 }
  0x32   : > { %789 = vmatpush3.msra.mxu0 %v353_v14 }
  0x33   : > { %790 = vmatprep.subr.mxu0 %v352_v15 }
  0x34   : > { %791 = vmatpush3.msra.mxu0 %v352_v15 }
  0x35   : > { %792 = vmatprep.subr.mxu0 %v351_v16 }
  0x36   : > { %793 = vmatpush3.msra.mxu0 %v351_v16 }
  0x37   : > { %795 = vmatmul.mubr.f32.vlgmr.msra.gmra.mxu0 %v350_v17 }
  0xf7   : > { %v796_v19 = vpop.f32.mrf.mxu0 }
  0xf8   : > { %797 = vmatprep.subr.mxu1 %v796_v19 }
  0xf9   : > { %v433_v20 = vpop.f32.mrf.mxu0  ;;  %798 = vmatpush3.msra.mxu1 %v796_v19 }
  0xfa   : > { %799 = vmatprep.subr.mxu1 %v433_v20 }
  0xfb   : > { %800 = vmatpush3.msra.mxu1 %v433_v20 }
  0xfc   : > { %802 = vmatmul.mubr.msk.f32.vlgmr.msra.gmra.mxu1 %vm444_vm0, %v346_v21 }
 0x1bc   : > { %v803_v23 = vpop.f32.mrf.mxu1 }
 0x1bd   : > { %v544_v25 = vadd.f32 %v803_v23, %v731_v22 }
 0x1be   : > { %v517_v26 = vpop.f32.mrf.mxu1 }
 0x1bf   : > { %vm546_vm1 = vcmp.ge.f32.partialorder %v544_v25, 0.0  ;;  %v549_v27 = vmul.f32 %v547_v24, %v544_v25  ;;  %v543_v28 = vadd.f32 %v731_v22, %v517_v26 }
 0x1c1   : > { %v551_v29 = vsel %vm546_vm1, %v544_v25, %v549_v27  ;;  %vm545_vm2 = vcmp.ge.f32.partialorder %v543_v28, 0.0  ;;  %v548_v30 = vmul.f32 %v547_v24, %v543_v28 }
 0x1c2   : > { %553 = vst [vmem:[%s303_s21 + $0x8] sm:$0xff] %v551_v29 }
 0x1c3   : > { %v550_v31 = vsel %vm545_vm2, %v543_v28, %v548_v30 }
 0x1c4   : > { %552 = vst [vmem:[%s303_s21] sm:$0xff] %v550_v31  ;;  %v554_v32 = vadd.f32 %v551_v29, %v550_v31 }
 0x1c5   : > { %874 = shalt.err (!%p871_p5)
}
 0x1c6   : > { %s875_s13 = scalar_lea.hbm %s1112_s4, 256  ;;  %s879_s16 = scalar_lea.hbm %s1168_s5, 512 }
 0x1c7   : > { %p876_p6 = scmp.ne.s32.totalorder %s1112_s4, %s875_s13  ;;  %p880_p10 = scmp.lt.s32.totalorder %s1112_s4, %s1168_s5 }
 0x1c8   : > { %p881_p11 = scmp.lt.s32.totalorder %s879_s16, %s875_s13 }
 0x1c9   : > { %p877_p7 = pnand %p876_p6, %p1020_p4 }
 0x1ca   : > { %p882_p12 = por %p881_p11, %p880_p10 }
 0x1cb   : > { %p878_p9 = pneg %p877_p7 }
 0x1cd   : > { %p883_p13 = pnand %p882_p12, %p878_p9 }
 0x1cf   : > { %886 = shalt.err (!%p883_p13)
}
 0x1d0   : > { %s940_s20 = smov 128   ;;  %s941_s22 = smov 8   ;;  %v555_v33 = vrot.slane %v554_v32, 4 }
 0x1d1   : > { %804 = dma.vmem_to_hbm [thread:$0]  (%p1020_p4), %s1107_s17, 256, %s1112_s4, %s1114_s26, %s940_s20, %s940_s20, %s941_s22  }
 0x1d2   : > { %v556_v34 = vadd.f32 %v555_v33, %v554_v32  ;;  %s728_s7 = sshll.u32 %s1046_s18, 3 }
 0x1d3   : > { %s338_s29 = scalar_lea.vmem %s1169_s6, %s728_s7 }
 0x1d4   : > { %v557_v35 = vrot.slane %v556_v34, 2 }
 0x1d6   : > { %v558_v36 = vadd.f32 %v557_v35, %v556_v34 }
 0x1d8   : > { %v559_v37 = vrot.slane %v558_v36, 1 }
 0x1da   : > { %v560_v38 = vadd.f32 %v559_v37, %v558_v36 }
 0x1dc   : > { %561 = vst [vmem:[%s338_s29] sm:$0xff] %v560_v38 }
 0x1dd PF: > { %p810_p0 = scmp.ge.s32.totalorder %s937_s28, 2  ;;  %s603_s13 = sand.u32 1, %s917_s23  }
 0x1de   : > { %s604_s8 = scalar_lea.sflag [#allocation5], %s603_s13 }
 0x1df   : > { %p807_p4 = pnand %p810_p0, %p1027_p8 }
 0x1e1   : > { %p808_p1 = pneg %p807_p4 }
 0x1e3   : > { %912 = dma.done.wait (%p808_p1), %s604_s8, 256  }
 0x1e4   : > { %914 = vsyncadd (%p808_p1), %s604_s8, 4294967040  ;;  %s21_s28 = sadd.s32 1, %s937_s28   ;;  %s1172_s23 = smov %s921_s24 }
 0x1e5   : > { %p18_p2 = scmp.ge.s32.totalorder %s21_s28, 4   ;;  %s1173_s24 = smov %s925_s25 }
 0x1e6   : > { %s1174_s25 = smov %s1033_s11  ;;  %s1175_s26 = smov %s933_s27 }
 0x1e7   : > { %s1176_s27 = smov %s1178_s30  ;;  %20 = sbr.rel (!%p18_p2) target bundleno = 6 (0x6), region = 99 }
 0x1ec   :  { %619 = vsyncpa [#allocation5], 1 }
 0x1ed   :  { %621 = vsyncpa [#allocation5 + $0x1], 1 }

</bundles_post_ra>
